<compile_context>
chip_gen: v6e
topology: v6e:2x2x1
jax: 0.10.0
libtpu: 0.0.40
codegen_flags: <defaults>
</compile_context>

<pallas_src>
import jax
import jax.numpy as jnp
from jax.experimental import pallas as pl
from jax.experimental.pallas import tpu as pltpu

CLAMP_MIN = 0.0
CLAMP_MAX = 2.0
TANH_ENABLED = False


def conv_clamp_sigmoid_kernel(w_ref, b_ref, x_ref, o_ref, xpad_ref):
    # w_ref:    (9,)            SMEM  flat 3x3 weights (row-major ky, kx)
    # b_ref:    (1,)            SMEM  bias
    # x_ref:    (Bn, 1, H, W)   VMEM  input block (channel kept as size-1 dim)
    # o_ref:    (Bn, 1, H, W)   VMEM  output block
    # xpad_ref: (Bn, H+2, W+2)  VMEM  scratch: zero-padded halo built in-kernel
    Bn = x_ref.shape[0]
    H = x_ref.shape[2]
    W = x_ref.shape[3]

    # Build the padding=1 halo entirely in VMEM: zero the scratch, copy interior.
    xpad_ref[...] = jnp.zeros_like(xpad_ref)
    xpad_ref[:, 1:H + 1, 1:W + 1] = x_ref[:, 0, :, :]

    # 3x3 conv (cross-correlation, matching torch/lax conv) as 9 shifted MACs.
    acc = jnp.full((Bn, H, W), b_ref[0], dtype=jnp.float32)
    for ky in range(3):
        for kx in range(3):
            acc = acc + w_ref[3 * ky + kx] * xpad_ref[:, ky:ky + H, kx:kx + W]

    # clamp_min(0) -> clamp_max(2) -> sigmoid (tanh branch statically disabled)
    acc = jnp.minimum(jnp.maximum(acc, CLAMP_MIN), CLAMP_MAX)
    out = jnp.tanh(acc) if TANH_ENABLED else jax.nn.sigmoid(acc)

    o_ref[:, 0, :, :] = out.astype(o_ref.dtype)


def _pick_batch_block(n, cap=64):
    """Largest divisor of n that is <= cap (keeps the grid exact)."""
    bn = min(n, cap)
    while n % bn != 0:
        bn -= 1
    return bn


def model_forward(x_nchw, weight, bias):
    """x_nchw: (N, 1, H, W) float32; weight: (1, 1, 3, 3); bias: (1,)."""
    N, C, H, W = x_nchw.shape
    assert C == 1, "module is Conv2d(1, 1, 3)"

    Bn = _pick_batch_block(N)

    w = weight.reshape(9).astype(jnp.float32)   # flat SMEM weights
    b = bias.reshape(1).astype(jnp.float32)
    x = x_nchw.astype(jnp.float32)

    out = pl.pallas_call(
        conv_clamp_sigmoid_kernel,
        out_shape=jax.ShapeDtypeStruct((N, 1, H, W), jnp.float32),
        grid=(N // Bn,),
        in_specs=[
            pl.BlockSpec(memory_space=pltpu.MemorySpace.SMEM),        # weight (9,)
            pl.BlockSpec(memory_space=pltpu.MemorySpace.SMEM),        # bias (1,)
            pl.BlockSpec((Bn, 1, H, W), lambda n: (n, 0, 0, 0)),      # x, unpadded
        ],
        out_specs=pl.BlockSpec((Bn, 1, H, W), lambda n: (n, 0, 0, 0)),
        scratch_shapes=[pltpu.VMEM((Bn, H + 2, W + 2), jnp.float32)],
        compiler_params=pltpu.CompilerParams(
            dimension_semantics=("parallel",)
        ),
    )(w, b, x)

    return out  # already (N, 1, H, W)


def reference_forward(x_nchw, weight, bias):
    """Pure-JAX reference (lax conv) for correctness check."""
    v1 = jax.lax.conv_general_dilated(
        x_nchw, weight,
        window_strides=(1, 1), padding=((1, 1), (1, 1)),
        dimension_numbers=("NCHW", "OIHW", "NCHW"),
    ) + bias.reshape(1, 1, 1, 1)
    v3 = jnp.minimum(jnp.maximum(v1, CLAMP_MIN), CLAMP_MAX)
    return jnp.tanh(v3) if TANH_ENABLED else jax.nn.sigmoid(v3)


if __name__ == "__main__":
    key = jax.random.PRNGKey(0)
    kx, kw, kb = jax.random.split(key, 3)

    N, C, H, W = 2, 1, 16, 16
    x = jax.random.normal(kx, (N, C, H, W), dtype=jnp.float32)

    # Deterministic parameter init (Conv2d(1, 1, 3) shapes).
    weight = jax.random.normal(kw, (1, 1, 3, 3), dtype=jnp.float32) * 0.1
    bias = jax.random.normal(kb, (1,), dtype=jnp.float32) * 0.1

    out = model_forward(x, weight, bias)
    out = jax.block_until_ready(out)

    ref = jax.block_until_ready(reference_forward(x, weight, bias))
    assert out.shape == (N, C, H, W)
    assert jnp.allclose(out, ref, atol=1e-5, rtol=1e-5), "mismatch vs reference"

    print("KERNEL_OK")
</pallas_src>

<mosaic_0001>
module attributes {stable_mosaic.version = 11 : i64} {
  func.func @conv_clamp_sigmoid_kernel(%arg0: i32, %arg1: memref<9xf32, #tpu.memory_space<smem>>, %arg2: memref<1xf32, #tpu.memory_space<smem>>, %arg3: memref<2x1x16x16xf32, #tpu.memory_space<vmem>>, %arg4: memref<2x1x16x16xf32, #tpu.memory_space<vmem>>, %arg5: memref<2x18x18xf32, #tpu.memory_space<vmem>>) attributes {dimension_semantics = [#tpu.dimension_semantics<parallel>], iteration_bounds = array<i64: 1>, scalar_prefetch = 0 : i64, scratch_operands = 1 : i64, tpu.core_type = #tpu.core_type<tc>, window_params = [{transform_indices = @transform_0, window_bounds = array<i64: 9>}, {transform_indices = @transform_1, window_bounds = array<i64: 1>}, {transform_indices = @transform_2, window_bounds = array<i64: 2, 1, 16, 16>}, {transform_indices = @transform_3, window_bounds = array<i64: 2, 1, 16, 16>}]} {
    %cst = arith.constant 0.000000e+00 : f32
    %0 = vector.broadcast %cst : f32 to vector<2x18x18xf32>
    %c0 = arith.constant 0 : index
    %c0_0 = arith.constant 0 : index
    %c0_1 = arith.constant 0 : index
    %1 = vector.load %arg5[%c0, %c0_0, %c0_1] : memref<2x18x18xf32, #tpu.memory_space<vmem>>, vector<2x18x18xf32>
    tpu.vector_store %arg5[%c0, %c0_0, %c0_1], %0 {strides = array<i32>} : memref<2x18x18xf32, #tpu.memory_space<vmem>>, vector<2x18x18xf32>,
    %c0_2 = arith.constant 0 : index
    %c0_3 = arith.constant 0 : index
    %c0_4 = arith.constant 0 : index
    %c0_5 = arith.constant 0 : index
    %2 = vector.load %arg3[%c0_2, %c0_3, %c0_4, %c0_5] : memref<2x1x16x16xf32, #tpu.memory_space<vmem>>, vector<2x1x16x16xf32>
    %3 = vector.shape_cast %2 : vector<2x1x16x16xf32> to vector<2x16x16xf32>
    %c0_6 = arith.constant 0 : index
    %c1 = arith.constant 1 : index
    %c1_7 = arith.constant 1 : index
    %4 = vector.load %arg5[%c0_6, %c1, %c1_7] : memref<2x18x18xf32, #tpu.memory_space<vmem>>, vector<2x16x16xf32>
    tpu.vector_store %arg5[%c0_6, %c1, %c1_7], %3 {strides = array<i32>} : memref<2x18x18xf32, #tpu.memory_space<vmem>>, vector<2x16x16xf32>,
    %c0_8 = arith.constant 0 : index
    %5 = memref.load %arg2[%c0_8] : memref<1xf32, #tpu.memory_space<smem>>
    %6 = vector.broadcast %5 : f32 to vector<2x16x16xf32>
    %c0_9 = arith.constant 0 : index
    %7 = memref.load %arg1[%c0_9] : memref<9xf32, #tpu.memory_space<smem>>
    %c0_10 = arith.constant 0 : index
    %c0_11 = arith.constant 0 : index
    %c0_12 = arith.constant 0 : index
    %8 = vector.load %arg5[%c0_10, %c0_11, %c0_12] : memref<2x18x18xf32, #tpu.memory_space<vmem>>, vector<2x16x16xf32>
    %9 = vector.broadcast %7 : f32 to vector<2x16x16xf32>
    %10 = arith.mulf %9, %8 : vector<2x16x16xf32>
    %11 = arith.addf %6, %10 : vector<2x16x16xf32>
    %c1_13 = arith.constant 1 : index
    %12 = memref.load %arg1[%c1_13] : memref<9xf32, #tpu.memory_space<smem>>
    %c0_14 = arith.constant 0 : index
    %c0_15 = arith.constant 0 : index
    %c1_16 = arith.constant 1 : index
    %13 = vector.load %arg5[%c0_14, %c0_15, %c1_16] : memref<2x18x18xf32, #tpu.memory_space<vmem>>, vector<2x16x16xf32>
    %14 = vector.broadcast %12 : f32 to vector<2x16x16xf32>
    %15 = arith.mulf %14, %13 : vector<2x16x16xf32>
    %16 = arith.addf %11, %15 : vector<2x16x16xf32>
    %c2 = arith.constant 2 : index
    %17 = memref.load %arg1[%c2] : memref<9xf32, #tpu.memory_space<smem>>
    %c0_17 = arith.constant 0 : index
    %c0_18 = arith.constant 0 : index
    %c2_19 = arith.constant 2 : index
    %18 = vector.load %arg5[%c0_17, %c0_18, %c2_19] : memref<2x18x18xf32, #tpu.memory_space<vmem>>, vector<2x16x16xf32>
    %19 = vector.broadcast %17 : f32 to vector<2x16x16xf32>
    %20 = arith.mulf %19, %18 : vector<2x16x16xf32>
    %21 = arith.addf %16, %20 : vector<2x16x16xf32>
    %c3 = arith.constant 3 : index
    %22 = memref.load %arg1[%c3] : memref<9xf32, #tpu.memory_space<smem>>
    %c0_20 = arith.constant 0 : index
    %c1_21 = arith.constant 1 : index
    %c0_22 = arith.constant 0 : index
    %23 = vector.load %arg5[%c0_20, %c1_21, %c0_22] : memref<2x18x18xf32, #tpu.memory_space<vmem>>, vector<2x16x16xf32>
    %24 = vector.broadcast %22 : f32 to vector<2x16x16xf32>
    %25 = arith.mulf %24, %23 : vector<2x16x16xf32>
    %26 = arith.addf %21, %25 : vector<2x16x16xf32>
    %c4 = arith.constant 4 : index
    %27 = memref.load %arg1[%c4] : memref<9xf32, #tpu.memory_space<smem>>
    %c0_23 = arith.constant 0 : index
    %c1_24 = arith.constant 1 : index
    %c1_25 = arith.constant 1 : index
    %28 = vector.load %arg5[%c0_23, %c1_24, %c1_25] : memref<2x18x18xf32, #tpu.memory_space<vmem>>, vector<2x16x16xf32>
    %29 = vector.broadcast %27 : f32 to vector<2x16x16xf32>
    %30 = arith.mulf %29, %28 : vector<2x16x16xf32>
    %31 = arith.addf %26, %30 : vector<2x16x16xf32>
    %c5 = arith.constant 5 : index
    %32 = memref.load %arg1[%c5] : memref<9xf32, #tpu.memory_space<smem>>
    %c0_26 = arith.constant 0 : index
    %c1_27 = arith.constant 1 : index
    %c2_28 = arith.constant 2 : index
    %33 = vector.load %arg5[%c0_26, %c1_27, %c2_28] : memref<2x18x18xf32, #tpu.memory_space<vmem>>, vector<2x16x16xf32>
    %34 = vector.broadcast %32 : f32 to vector<2x16x16xf32>
    %35 = arith.mulf %34, %33 : vector<2x16x16xf32>
    %36 = arith.addf %31, %35 : vector<2x16x16xf32>
    %c6 = arith.constant 6 : index
    %37 = memref.load %arg1[%c6] : memref<9xf32, #tpu.memory_space<smem>>
    %c0_29 = arith.constant 0 : index
    %c2_30 = arith.constant 2 : index
    %c0_31 = arith.constant 0 : index
    %38 = vector.load %arg5[%c0_29, %c2_30, %c0_31] : memref<2x18x18xf32, #tpu.memory_space<vmem>>, vector<2x16x16xf32>
    %39 = vector.broadcast %37 : f32 to vector<2x16x16xf32>
    %40 = arith.mulf %39, %38 : vector<2x16x16xf32>
    %41 = arith.addf %36, %40 : vector<2x16x16xf32>
    %c7 = arith.constant 7 : index
    %42 = memref.load %arg1[%c7] : memref<9xf32, #tpu.memory_space<smem>>
    %c0_32 = arith.constant 0 : index
    %c2_33 = arith.constant 2 : index
    %c1_34 = arith.constant 1 : index
    %43 = vector.load %arg5[%c0_32, %c2_33, %c1_34] : memref<2x18x18xf32, #tpu.memory_space<vmem>>, vector<2x16x16xf32>
    %44 = vector.broadcast %42 : f32 to vector<2x16x16xf32>
    %45 = arith.mulf %44, %43 : vector<2x16x16xf32>
    %46 = arith.addf %41, %45 : vector<2x16x16xf32>
    %c8 = arith.constant 8 : index
    %47 = memref.load %arg1[%c8] : memref<9xf32, #tpu.memory_space<smem>>
    %c0_35 = arith.constant 0 : index
    %c2_36 = arith.constant 2 : index
    %c2_37 = arith.constant 2 : index
    %48 = vector.load %arg5[%c0_35, %c2_36, %c2_37] : memref<2x18x18xf32, #tpu.memory_space<vmem>>, vector<2x16x16xf32>
    %49 = vector.broadcast %47 : f32 to vector<2x16x16xf32>
    %50 = arith.mulf %49, %48 : vector<2x16x16xf32>
    %51 = arith.addf %46, %50 : vector<2x16x16xf32>
    %cst_38 = arith.constant 0.000000e+00 : f32
    %52 = vector.broadcast %cst_38 : f32 to vector<2x16x16xf32>
    %53 = arith.maximumf %51, %52 : vector<2x16x16xf32>
    %cst_39 = arith.constant 2.000000e+00 : f32
    %54 = vector.broadcast %cst_39 : f32 to vector<2x16x16xf32>
    %55 = arith.minimumf %53, %54 : vector<2x16x16xf32>
    %56 = arith.negf %55 : vector<2x16x16xf32>
    %57 = math.exp %56 : vector<2x16x16xf32>
    %cst_40 = arith.constant 1.000000e+00 : f32
    %58 = vector.broadcast %cst_40 : f32 to vector<2x16x16xf32>
    %59 = arith.addf %58, %57 : vector<2x16x16xf32>
    %60 = arith.divf %58, %59 : vector<2x16x16xf32>
    %c0_41 = arith.constant 0 : index
    %c0_42 = arith.constant 0 : index
    %c0_43 = arith.constant 0 : index
    %c0_44 = arith.constant 0 : index
    %61 = vector.load %arg4[%c0_41, %c0_42, %c0_43, %c0_44] : memref<2x1x16x16xf32, #tpu.memory_space<vmem>>, vector<2x1x16x16xf32>
    %62 = vector.shape_cast %61 : vector<2x1x16x16xf32> to vector<2x16x16xf32>
    %63 = vector.shape_cast %60 : vector<2x16x16xf32> to vector<2x1x16x16xf32>
    tpu.vector_store %arg4[%c0_41, %c0_42, %c0_43, %c0_44], %63 {strides = array<i32>} : memref<2x1x16x16xf32, #tpu.memory_space<vmem>>, vector<2x1x16x16xf32>,
    return
  }
  func.func @transform_0(%arg0: i32) -> i32 {
    %c0_i32 = arith.constant 0 : i32
    %c0_i32_0 = arith.constant 0 : i32
    return %c0_i32 : i32
  }
  func.func @transform_1(%arg0: i32) -> i32 {
    %c0_i32 = arith.constant 0 : i32
    %c0_i32_0 = arith.constant 0 : i32
    return %c0_i32 : i32
  }
  func.func @transform_2(%arg0: i32) -> (i32, i32, i32, i32) {
    %c0_i32 = arith.constant 0 : i32
    %c0_i32_0 = arith.constant 0 : i32
    %c0_i32_1 = arith.constant 0 : i32
    %c0_i32_2 = arith.constant 0 : i32
    return %arg0, %c0_i32, %c0_i32_0, %c0_i32_1 : i32, i32, i32, i32
  }
  func.func @transform_3(%arg0: i32) -> (i32, i32, i32, i32) {
    %c0_i32 = arith.constant 0 : i32
    %c0_i32_0 = arith.constant 0 : i32
    %c0_i32_1 = arith.constant 0 : i32
    %c0_i32_2 = arith.constant 0 : i32
    return %arg0, %c0_i32, %c0_i32_0, %c0_i32_1 : i32, i32, i32, i32
  }
}

</mosaic_0001>

<bundles_post_ra>
// kernel: tpu_custom_call.1
= control target key start
LH: loop header
LB: loop body
LE: loop exit
PB: predicated region body
PF: predicated region fallthrough
CT: control target
= control target key end

     0   :  { %9 = vsyncpa [#allocation7], 0  ;;  %s557_s0 = inlined_call_operand.vmem [shape: f32[9], index: 0, kind: input, shape index: {}]   ;;  %s558_s1 = inlined_call_operand.<no memory space> [shape: f32[1], index: 1, kind: input, shape index: {}]   ;;  %s559_s2 = inlined_call_operand.hbm [shape: f32[2,1,16,16], index: 2, kind: input, shape index: {}]   ;;  %s560_s3 = inlined_call_operand.hbm [shape: f32[2,1,16,16], index: 3, kind: output, shape index: {}]  }
   0x1   :  { %10 = vsyncpa [#allocation5], 0 }
   0x2   :  { %11 = vsyncpa [#allocation6], 0  ;;  %s18_s14 = sshll.u32 %s557_s0, 4  ;;  %s19_s14 = int_to_ptr.vmem [resolvable:$true] %s18_s14 }
   0x3   :  { %s368_s15 = scalar_lea.vmem %s19_s14, 16  ;;  %p373_p1 = scmp.lt.s32.totalorder %s19_s14, %s19_s14 }
   0x4   :  { %p369_p0 = scmp.ne.s32.totalorder %s19_s14, %s368_s15  ;;  %p374_p2 = scmp.lt.s32.totalorder %s368_s15, %s368_s15 }
   0x6   :  { %p375_p3 = por %p374_p2, %p373_p1 }
   0x8   :  { %p376_p4 = pnand %p375_p3, %p369_p0 }
   0xa   :  { %379 = shalt.err (!%p376_p4)
}
   0xb   :  { %s426_s16 = smov [#allocation4]   ;;  %s427_s17 = smov [#allocation8]  }
   0xc   :  { %21 = dma.vmem_to_smem %s19_s14, 16, %s426_s16, [#allocation7]  }
   0xd   :  { %s29_s18 = sshll.u32 %s427_s17, 4  ;;  %s30_s18 = int_to_ptr.vmem [resolvable:$true] %s29_s18 }
   0xe   :  { %s388_s19 = scalar_lea.vmem %s30_s18, 512  ;;  %p393_p6 = scmp.lt.s32.totalorder %s30_s18, %s30_s18 }
   0xf   :  { %p389_p5 = scmp.ne.s32.totalorder %s30_s18, %s388_s19  ;;  %p394_p7 = scmp.lt.s32.totalorder %s388_s19, %s388_s19 }
  0x11   :  { %p395_p8 = por %p394_p7, %p393_p6 }
  0x13   :  { %p396_p9 = pnand %p395_p8, %p389_p5 }
  0x15   :  { %399 = shalt.err (!%p396_p9)
}
  0x16   :  { %s428_s0 = smov 128   ;;  %s429_s20 = smov 8  }
  0x17   :  { %35 = dma.hbm_to_vmem [thread:$0]  %s559_s2, 512, %s30_s18, [#allocation5], %s428_s0, %s428_s0, %s429_s20  }
  0x18   :  { %420 = dma.done.wait [#allocation7], 16  }
  0x19   :  { %421 = vsyncadd [#allocation7], 4294967280 }
  0x1a   :  { %422 = dma.done.wait [#allocation5], 512  }
  0x1b   :  { %423 = vsyncadd [#allocation5], 4294966784 }
  0x1c   :  { %42 = sfence }
  0x1d   :  { %v53_v0 = vld [vmem:[#allocation8 + $0x10] sm:$0xff]  ;;  %v51_v1 = vld [vmem:[#allocation8] sm:$0xff]  ;;  %vm43_vm0 = vcmask 146432   ;;  %s430_s23 = smov 1   ;;  %vm46_vm1 = vcmask 140288   ;;  %v54_v2 = vld [vmem:[#allocation8 + $0x18] sm:$0xff]  ;;  %v77_v54 = vstv %s558_s1 }
  0x1e   :  { %63 = vrot.lane.b32.xlu1 %v53_v0, %s430_s23  ;;  %59 = vrot.lane.b32.xlu0 %v51_v1, %s430_s23  ;;  %v52_v3 = vld [vmem:[#allocation8 + $0x8] sm:$0xff]  ;;  %v431_v4 = vmov 0.0   ;;  %vm71_vm2 = vcmask 138248   ;;  %s331_s2 = sld [smem:[#allocation4 + $0x1]]  ;;  %s432_s25 = smov 127   ;;  %vm308_vm3 = vcmask 130048  }
  0x1f   :  { %48 = vst.msk [vmem:[#allocation2 + $0x18] sm:$0xff] %vm43_vm0, %v431_v4  ;;  %49 = vst.msk [vmem:[#allocation2 + $0x20] sm:$0xff] %vm43_vm0, %v431_v4  ;;  %s332_s24 = sld [smem:[#allocation4 + $0x2]]  ;;  %s433_s27 = smov 126  }
  0x20   :  { %44 = vst.msk [vmem:[#allocation2] sm:$0xff] %vm43_vm0, %v431_v4  ;;  %45 = vst.msk [vmem:[#allocation2 + $0x8] sm:$0xff] %vm43_vm0, %v431_v4  ;;  %s334_s26 = sld [smem:[#allocation4 + $0x4]]  ;;  %s434_s8 = smov [#allocation9]  }
  0x21   :  { %50 = vst.msk [vmem:[#allocation2 + $0x28] sm:$0x3] %vm46_vm1, %v431_v4  ;;  %47 = vst.msk [vmem:[#allocation2 + $0x10] sm:$0x3] %vm46_vm1, %v431_v4  ;;  %s335_s28 = sld [smem:[#allocation4 + $0x5]]  ;;  %s318_s9 = sshll.u32 %s434_s8, 4  ;;  %s319_s9 = int_to_ptr.vmem [resolvable:$true] %s318_s9 }
  0x22   :  { %65 = vrot.lane.b32.xlu1 %v54_v2, %s430_s23  ;;  %61 = vrot.lane.b32.xlu0 %v52_v3, %s430_s23  ;;  %s337_s29 = sld [smem:[#allocation4 + $0x7]]  ;;  %s400_s10 = scalar_lea.vmem %s319_s9, 512 }
  0x23   :  { %s338_s30 = sld [smem:[#allocation4 + $0x8]]  ;;  %p401_p10 = scmp.ne.s32.totalorder %s319_s9, %s400_s10 }
  0x24   :  { %v93_v9 = vstv %s331_s2  ;;  %s78_s4 = sld [smem:[#allocation4]]  ;;  %p405_p11 = scmp.lt.s32.totalorder %s319_s9, %s319_s9 }
  0x25   :  { %v119_v17 = vstv %s332_s24  ;;  %s333_s5 = sld [smem:[#allocation4 + $0x3]]  ;;  %p406_p12 = scmp.lt.s32.totalorder %s400_s10, %s400_s10 }
  0x26   :  { %v159_v23 = vstv %s334_s26  ;;  %s336_s1 = sld [smem:[#allocation4 + $0x6]] }
  0x27   :  { %v185_v31 = vstv %s335_s28  ;;  %p407_p13 = por %p406_p12, %p405_p11 }
  0x28   :  { %v225_v37 = vstv %s337_s29 }
  0x29   :  { %v251_v45 = vstv %s338_s30  ;;  %p408_p0 = pnand %p407_p13, %p401_p10 }
  0x2a   :  { %v83_v51 = vstv %s78_s4 }
  0x2b   :  { %v149_v60 = vstv %s333_s5 }
  0x90   :  { %v64_v5 = vpop.permute.xlu1 %63  ;;  %v60_v6 = vpop.permute.xlu0 %59 }
  0x91   :  { %74 = vst.msk [vmem:[#allocation2 + $0x19] sm:$0xff] %vm71_vm2, %v64_v5  ;;  %72 = vst.msk [vmem:[#allocation2 + $0x1] sm:$0xff] %vm71_vm2, %v60_v6 }
  0x94   :  { %v66_v7 = vpop.permute.xlu1 %65  ;;  %v62_v8 = vpop.permute.xlu0 %61 }
  0x95   :  { %75 = vst.msk [vmem:[#allocation2 + $0x21] sm:$0xff] %vm71_vm2, %v66_v7  ;;  %73 = vst.msk [vmem:[#allocation2 + $0x9] sm:$0xff] %vm71_vm2, %v62_v8 }
  0x98   :  { %v464_v10 = vld [vmem:[#allocation2] sm:$0xff]  ;;  %v466_v11 = vld [vmem:[#allocation2 + $0x18] sm:$0xff] }
  0x99   :  { %v94_v12 = vmul.f32 %v93_v9, %v464_v10  ;;  %v96_v13 = vmul.f32 %v93_v9, %v466_v11  ;;  %v120_v19 = vmul.f32 %v119_v17, %v464_v10  ;;  %v122_v21 = vmul.f32 %v119_v17, %v466_v11  ;;  %v484_v22 = vld [vmem:[#allocation2 + $0x1] sm:$0xff]  ;;  %v492_v27 = vld [vmem:[#allocation2 + $0x19] sm:$0xff] }
  0x9a   :  { %v160_v25 = vmul.f32 %v159_v23, %v484_v22  ;;  %v162_v29 = vmul.f32 %v159_v23, %v492_v27  ;;  %v186_v33 = vmul.f32 %v185_v31, %v484_v22  ;;  %v188_v35 = vmul.f32 %v185_v31, %v492_v27 }
  0x9b   :  { %102 = vrot.lane.b32.xlu0 %v94_v12, %s432_s25  ;;  %v84_v53 = vmul.f32 %v83_v51, %v464_v10  ;;  %v86_v59 = vmul.f32 %v83_v51, %v466_v11  ;;  %v150_v0 = vmul.f32 %v149_v60, %v484_v22  ;;  %v152_v10 = vmul.f32 %v149_v60, %v492_v27 }
  0x9c   :  { %v471_v14 = vld [vmem:[#allocation2 + $0x8] sm:$0xff]  ;;  %v474_v16 = vld [vmem:[#allocation2 + $0x20] sm:$0xff] }
  0x9d   :  { %v95_v15 = vmul.f32 %v93_v9, %v471_v14  ;;  %v97_v18 = vmul.f32 %v93_v9, %v474_v16  ;;  %v121_v20 = vmul.f32 %v119_v17, %v471_v14  ;;  %v123_v24 = vmul.f32 %v119_v17, %v474_v16  ;;  %v490_v26 = vld [vmem:[#allocation2 + $0x9] sm:$0xff]  ;;  %v498_v30 = vld [vmem:[#allocation2 + $0x21] sm:$0xff] }
  0x9e   :  { %v161_v28 = vmul.f32 %v159_v23, %v490_v26  ;;  %v163_v32 = vmul.f32 %v159_v23, %v498_v30  ;;  %v187_v34 = vmul.f32 %v185_v31, %v490_v26  ;;  %v508_v36 = vld [vmem:[#allocation2 + $0x2] sm:$0xff]  ;;  %v189_v38 = vmul.f32 %v185_v31, %v498_v30  ;;  %v514_v40 = vld [vmem:[#allocation2 + $0xa] sm:$0xff]  ;;  %v516_v41 = vld [vmem:[#allocation2 + $0x1a] sm:$0xff] }
  0x9f   :  { %104 = vrot.lane.b32.xlu1 %v95_v15, %s432_s25  ;;  %106 = vrot.lane.b32.xlu0 %v96_v13, %s432_s25  ;;  %v226_v39 = vmul.f32 %v225_v37, %v508_v36  ;;  %v227_v42 = vmul.f32 %v225_v37, %v514_v40  ;;  %v228_v43 = vmul.f32 %v225_v37, %v516_v41  ;;  %v522_v44 = vld [vmem:[#allocation2 + $0x22] sm:$0xff] }
  0xa0   :  { %v229_v46 = vmul.f32 %v225_v37, %v522_v44  ;;  %v252_v47 = vmul.f32 %v251_v45, %v508_v36  ;;  %v253_v48 = vmul.f32 %v251_v45, %v514_v40  ;;  %v254_v49 = vmul.f32 %v251_v45, %v516_v41 }
  0xa1   :  { %v255_v50 = vmul.f32 %v251_v45, %v522_v44  ;;  %v88_v57 = vadd.f32 %v84_v53, %v77_v54  ;;  %v85_v58 = vmul.f32 %v83_v51, %v471_v14  ;;  %v90_v2 = vadd.f32 %v86_v59, %v77_v54 }
  0xa2   :  { %v87_v3 = vmul.f32 %v83_v51, %v474_v16  ;;  %v151_v14 = vmul.f32 %v149_v60, %v490_v26 }
  0xa3   :  { %108 = vrot.lane.b32.xlu1 %v97_v18, %s432_s25  ;;  %128 = vrot.lane.b32.xlu0 %v120_v19, %s433_s27  ;;  %v89_v1 = vadd.f32 %v85_v58, %v77_v54 }
  0xa4   :  { %v91_v12 = vadd.f32 %v87_v3, %v77_v54 }
  0xa7   :  { %130 = vrot.lane.b32.xlu1 %v121_v20, %s433_s27  ;;  %132 = vrot.lane.b32.xlu0 %v122_v21, %s433_s27  ;;  %v153_v21 = vmul.f32 %v149_v60, %v498_v30 }
  0xab   :  { %134 = vrot.lane.b32.xlu1 %v123_v24, %s433_s27  ;;  %168 = vrot.lane.b32.xlu0 %v160_v25, %s432_s25  ;;  %v215_v25 = vstv %s336_s1 }
  0xac   :  { %v218_v30 = vmul.f32 %v215_v25, %v516_v41 }
  0xaf   :  { %170 = vrot.lane.b32.xlu1 %v161_v28, %s432_s25  ;;  %172 = vrot.lane.b32.xlu0 %v162_v29, %s432_s25 }
  0xb3   :  { %174 = vrot.lane.b32.xlu1 %v163_v32, %s432_s25  ;;  %194 = vrot.lane.b32.xlu0 %v186_v33, %s433_s27  ;;  %v216_v32 = vmul.f32 %v215_v25, %v508_v36 }
  0xb7   :  { %196 = vrot.lane.b32.xlu1 %v187_v34, %s433_s27  ;;  %198 = vrot.lane.b32.xlu0 %v188_v35, %s433_s27 }
  0xbb   :  { %200 = vrot.lane.b32.xlu1 %v189_v38, %s433_s27  ;;  %234 = vrot.lane.b32.xlu0 %v226_v39, %s432_s25 }
  0xbf   :  { %236 = vrot.lane.b32.xlu1 %v227_v42, %s432_s25  ;;  %238 = vrot.lane.b32.xlu0 %v228_v43, %s432_s25  ;;  %v217_v42 = vmul.f32 %v215_v25, %v514_v40 }
  0xc3   :  { %240 = vrot.lane.b32.xlu1 %v229_v46, %s432_s25  ;;  %260 = vrot.lane.b32.xlu0 %v252_v47, %s433_s27 }
  0xc7   :  { %262 = vrot.lane.b32.xlu1 %v253_v48, %s433_s27  ;;  %264 = vrot.lane.b32.xlu0 %v254_v49, %s433_s27 }
  0xcb   :  { %266 = vrot.lane.b32.xlu1 %v255_v50, %s433_s27  ;;  %v219_v50 = vmul.f32 %v215_v25, %v522_v44 }
 0x10d   :  { %v103_v52 = vpop.permute.xlu0 %102 }
 0x10e   :  { %v114_v61 = vadd.f32 %v103_v52, %v88_v57 }
 0x111   :  { %v105_v55 = vpop.permute.xlu1 %104  ;;  %v107_v56 = vpop.permute.xlu0 %106 }
 0x112   :  { %v115_v5 = vadd.f32 %v105_v55, %v89_v1  ;;  %v116_v6 = vadd.f32 %v107_v56, %v90_v2 }
 0x115   :  { %v109_v62 = vpop.permute.xlu1 %108  ;;  %v129_v63 = vpop.permute.xlu0 %128 }
 0x116   :  { %v140_v4 = vadd.f32 %v129_v63, %v114_v61  ;;  %v117_v15 = vadd.f32 %v109_v62, %v91_v12 }
 0x118   :  { %v154_v7 = vadd.f32 %v150_v0, %v140_v4 }
 0x119   :  { %v131_v8 = vpop.permute.xlu1 %130  ;;  %v133_v9 = vpop.permute.xlu0 %132 }
 0x11a   :  { %v141_v11 = vadd.f32 %v131_v8, %v115_v5  ;;  %v142_v13 = vadd.f32 %v133_v9, %v116_v6 }
 0x11c   :  { %v155_v17 = vadd.f32 %v151_v14, %v141_v11  ;;  %v156_v18 = vadd.f32 %v152_v10, %v142_v13 }
 0x11d   :  { %v135_v19 = vpop.permute.xlu1 %134  ;;  %v169_v20 = vpop.permute.xlu0 %168 }
 0x11e   :  { %v143_v16 = vadd.f32 %v135_v19, %v117_v15  ;;  %v180_v28 = vadd.f32 %v169_v20, %v154_v7 }
 0x120   :  { %v157_v22 = vadd.f32 %v153_v21, %v143_v16 }
 0x121   :  { %v171_v23 = vpop.permute.xlu1 %170  ;;  %v173_v24 = vpop.permute.xlu0 %172 }
 0x122   :  { %v181_v26 = vadd.f32 %v171_v23, %v155_v17  ;;  %v182_v33 = vadd.f32 %v173_v24, %v156_v18 }
 0x125   :  { %v175_v27 = vpop.permute.xlu1 %174  ;;  %v195_v29 = vpop.permute.xlu0 %194 }
 0x126   :  { %v206_v31 = vadd.f32 %v195_v29, %v180_v28  ;;  %v183_v43 = vadd.f32 %v175_v27, %v157_v22 }
 0x128   :  { %v220_v34 = vadd.f32 %v216_v32, %v206_v31 }
 0x129   :  { %v197_v35 = vpop.permute.xlu1 %196  ;;  %v199_v37 = vpop.permute.xlu0 %198 }
 0x12a   :  { %v207_v38 = vadd.f32 %v197_v35, %v181_v26  ;;  %v208_v39 = vadd.f32 %v199_v37, %v182_v33 }
 0x12c   :  { %v221_v45 = vadd.f32 %v217_v42, %v207_v38  ;;  %v222_v46 = vadd.f32 %v218_v30, %v208_v39 }
 0x12d   :  { %v201_v47 = vpop.permute.xlu1 %200  ;;  %v235_v48 = vpop.permute.xlu0 %234 }
 0x12e   :  { %v209_v49 = vadd.f32 %v201_v47, %v183_v43  ;;  %v246_v53 = vadd.f32 %v235_v48, %v220_v34 }
 0x130   :  { %v223_v36 = vadd.f32 %v219_v50, %v209_v49 }
 0x131   :  { %v237_v51 = vpop.permute.xlu1 %236  ;;  %v239_v52 = vpop.permute.xlu0 %238 }
 0x132   :  { %v247_v57 = vadd.f32 %v237_v51, %v221_v45  ;;  %v248_v58 = vadd.f32 %v239_v52, %v222_v46 }
 0x135   :  { %v241_v54 = vpop.permute.xlu1 %240  ;;  %v261_v55 = vpop.permute.xlu0 %260 }
 0x136   :  { %v272_v56 = vadd.f32 %v261_v55, %v246_v53  ;;  %v249_v63 = vadd.f32 %v241_v54, %v223_v36 }
 0x138   :  { %v276_v40 = vmax.f32 %v272_v56, 0.0 }
 0x139   :  { %v263_v59 = vpop.permute.xlu1 %262  ;;  %v265_v41 = vpop.permute.xlu0 %264 }
 0x13a   :  { %v280_v60 = vmin.f32 %v276_v40, 2.0  ;;  %v273_v61 = vadd.f32 %v263_v59, %v247_v57  ;;  %v274_v62 = vadd.f32 %v265_v41, %v248_v58 }
 0x13c   :  { %v339_v0 = vmul.f32 -1.442695, %v280_v60  ;;  %v277_v1 = vmax.f32 %v273_v61, 0.0  ;;  %v278_v2 = vmax.f32 %v274_v62, 0.0 }
 0x13d   :  { %v267_v44 = vpop.permute.xlu1 %266 }
 0x13e   :  { %352 = vpow2.f32 %v339_v0  ;;  %v281_v3 = vmin.f32 %v277_v1, 2.0  ;;  %v282_v4 = vmin.f32 %v278_v2, 2.0  ;;  %v275_v5 = vadd.f32 %v267_v44, %v249_v63 }
 0x140   :  { %v340_v6 = vmul.f32 -1.442695, %v281_v3  ;;  %v341_v7 = vmul.f32 -1.442695, %v282_v4  ;;  %v279_v8 = vmax.f32 %v275_v5, 0.0 }
 0x142   :  { %354 = vpow2.f32 %v340_v6  ;;  %v283_v9 = vmin.f32 %v279_v8, 2.0 }
 0x143   :  { %356 = vpow2.f32 %v341_v7 }
 0x144   :  { %v342_v10 = vmul.f32 -1.442695, %v283_v9 }
 0x146   :  { %358 = vpow2.f32 %v342_v10 }
 0x14b   :  { %v353_v12 = vpop.eup %352 }
 0x14c   :  { %v296_v11 = vadd.f32 1.0, %v353_v12 }
 0x14e   :  { %360 = vrcp.f32 %v296_v11 }
 0x14f   :  { %v355_v13 = vpop.eup %354 }
 0x150   :  { %v357_v14 = vpop.eup %356  ;;  %v297_v15 = vadd.f32 1.0, %v355_v13 }
 0x151   :  { %v298_v17 = vadd.f32 1.0, %v357_v14 }
 0x152   :  { %362 = vrcp.f32 %v297_v15 }
 0x153   :  { %v359_v18 = vpop.eup %358  ;;  %364 = vrcp.f32 %v298_v17 }
 0x154   :  { %v299_v19 = vadd.f32 1.0, %v359_v18 }
 0x156   :  { %366 = vrcp.f32 %v299_v19 }
 0x15b   :  { %v361_v20 = vpop.eup %360 }
 0x15c   :  { %309 = vst.msk [vmem:[#allocation9] sm:$0xff] %vm308_vm3, %v361_v20 }
 0x15f   :  { %v363_v16 = vpop.eup %362 }
 0x160   :  { %v365_v21 = vpop.eup %364  ;;  %310 = vst.msk [vmem:[#allocation9 + $0x8] sm:$0xff] %vm308_vm3, %v363_v16 }
 0x161   :  { %311 = vst.msk [vmem:[#allocation9 + $0x10] sm:$0xff] %vm308_vm3, %v365_v21 }
 0x163   :  { %v367_v22 = vpop.eup %366 }
 0x164   :  { %312 = vst.msk [vmem:[#allocation9 + $0x18] sm:$0xff] %vm308_vm3, %v367_v22 }
 0x165   :  { %411 = shalt.err (!%p408_p0)
}
 0x166   :  { %324 = dma.vmem_to_hbm [thread:$0]  %s319_s9, 512, %s560_s3, [#allocation6], %s428_s0, %s428_s0, %s429_s20  }
 0x167   :  { %424 = dma.done.wait [#allocation6], 512  }
 0x168   :  { %425 = vsyncadd [#allocation6], 4294966784 }
 0x169   :  { %328 = vsyncpa [#allocation5], 1 }
 0x16a   :  { %329 = vsyncpa [#allocation6], 1 }
 0x16b   :  { %330 = vsyncpa [#allocation7], 1 }

</bundles_post_ra>
